<compile_context>
chip_gen: v6e
topology: v6e:2x2x1
jax: 0.10.0
libtpu: 0.0.40
codegen_flags: <defaults>
</compile_context>

<pallas_src>
import functools

import jax
import jax.numpy as jnp
from jax.experimental import pallas as pl
from jax.experimental.pallas import tpu as pltpu


_TARGET_TILE_BYTES = 2 * 1024 * 1024  # ~2 MiB f32 per buffer per stream


def _round_up(x, m):
    return -(-x // m) * m


def _sublane_multiple(*dtypes):
    # Minimum second-to-last-dim tile per dtype: f32 -> 8, bf16 -> 16, i8/fp8 -> 32.
    return max(32 // jnp.dtype(d).itemsize for d in dtypes)


def _choose_lane(total):
    """Largest lane width (multiple of 128) that divides `total`.

    Prefers a width that still leaves >= 16 rows so the grid can be split
    across v7x's two TensorCores.  Returns None if no 128-multiple divides
    `total` (ragged fallback)."""
    for lane in (512, 256, 128):
        if total % lane == 0 and (total // lane) >= 16:
            return lane
    for lane in (512, 256, 128):
        if total % lane == 0:
            return lane
    return None


def _bce_kernel(pred_ref, label_ref, out_ref, *, fore_w, w_diff, use_weights):
    # Numerically stable BCE-with-logits (PyTorch semantics):
    #   loss = max(x, 0) - x*y + log(1 + exp(-|x|))
    x = pred_ref[...].astype(jnp.float32)
    y = label_ref[...].astype(jnp.float32)

    loss = jnp.maximum(x, 0.0) - x * y + jnp.log1p(jnp.exp(-jnp.abs(x)))

    if use_weights:
        # weights = label * back_w + (1 - label) * fore_w
        #         = fore_w + label * (back_w - fore_w)   (FMA-folded)
        loss = loss * (jnp.float32(fore_w) + y * jnp.float32(w_diff))
    # else: weights == ones -> no-op.

    out_ref[...] = loss.astype(out_ref.dtype)


def bce_loss(pred, label, weights=None):
    """Pallas implementation of bce_loss.forward (reduction='none').

    pred, label: same shape (e.g. NCHW).  label may be any dtype (f32/bf16/int);
    it is widened to f32 inside the kernel (narrow labels cut HBM traffic).
    weights: optional (fore, back) pair of Python scalars baked into the kernel.
    Returns the elementwise loss with the same shape and dtype as `pred`.
    """
    assert pred.shape == label.shape
    orig_shape = pred.shape
    out_dtype = pred.dtype
    total = int(pred.size)

    # ---- Lane-dense (rows, lane) view; no padding when total % 128 == 0. ----
    lane = _choose_lane(total)
    padded = lane is None
    if padded:
        # Rare ragged case (< 128-element pad).  Costs one extra pass over the
        # inputs and one over the output; only taken for non-128-multiple sizes.
        lane = 128
        pad = _round_up(total, lane) - total
        pred2d = jnp.pad(pred.reshape(-1), (0, pad)).reshape(-1, lane)
        label2d = jnp.pad(label.reshape(-1), (0, pad)).reshape(-1, lane)
    else:
        pred2d = pred.reshape(-1, lane)
        label2d = label.reshape(-1, lane)

    rows = pred2d.shape[0]
    sub = _sublane_multiple(pred.dtype, label.dtype, out_dtype)

    # ---- Row tiling: big tiles, >=2 (preferably even) tiles for megacore. ----
    if rows >= 2 * sub:
        target_tile_r = max(sub, ((_TARGET_TILE_BYTES // 4) // lane) // sub * sub)
        n_tiles = max(2, -(-rows // target_tile_r))
        if n_tiles % 2:
            n_tiles += 1          # even split -> balanced across 2 TCs on v7x
        tile_r = _round_up(-(-rows // n_tiles), sub)
        grid_n = -(-rows // tile_r)   # non-dividing grid: ragged tail is masked
    else:
        tile_r = rows             # single block == full dims (exempt from 8x128 rule)
        grid_n = 1

    # ---- Bake the (static) weight config into the kernel. ----
    use_weights = weights is not None
    fore_w = float(weights[0]) if use_weights else 1.0
    back_w = float(weights[1]) if use_weights else 1.0
    w_diff = back_w - fore_w

    kernel = functools.partial(
        _bce_kernel, fore_w=fore_w, w_diff=w_diff, use_weights=use_weights
    )

    out2d = pl.pallas_call(
        kernel,
        out_shape=jax.ShapeDtypeStruct((rows, lane), out_dtype),
        grid_spec=pl.GridSpec(
            grid=(grid_n,),
            in_specs=[
                pl.BlockSpec((tile_r, lane), lambda i: (i, 0)),
                pl.BlockSpec((tile_r, lane), lambda i: (i, 0)),
            ],
            out_specs=pl.BlockSpec((tile_r, lane), lambda i: (i, 0)),
        ),
        compiler_params=pltpu.CompilerParams(
            # Row tiles are independent -> shard across TCs on v7x megacore.
            dimension_semantics=("parallel",),
        ),
    )(pred2d, label2d)

    if padded:
        return out2d.reshape(-1)[:total].reshape(orig_shape)
    return out2d.reshape(orig_shape)


def _reference_bce(pred, label, weights=None):
    x = pred.astype(jnp.float32)
    y = label.astype(jnp.float32)
    loss = jnp.maximum(x, 0.0) - x * y + jnp.log1p(jnp.exp(-jnp.abs(x)))
    if weights is not None:
        # Matches the PyTorch module: label*back + (1-label)*fore.
        w = y * weights[1] + (1.0 - y) * weights[0]
        loss = loss * w
    return loss


if __name__ == "__main__":
    key = jax.random.PRNGKey(0)
    k1, k2, k3, k4, k5, k6 = jax.random.split(key, 6)

    # --- Small NCHW segmentation-style inputs (no-pad path, grid of 2). ---
    N, C, H, W = 2, 4, 16, 16
    pred = jax.random.normal(k1, (N, C, H, W), dtype=jnp.float32) * 3.0
    label = (jax.random.uniform(k2, (N, C, H, W)) > 0.5).astype(jnp.float32)

    # Default module config: weights=None
    out = jax.block_until_ready(bce_loss(pred, label, weights=None))
    ref = _reference_bce(pred, label, weights=None)
    assert out.shape == pred.shape and out.dtype == pred.dtype
    assert jnp.allclose(out, ref, atol=1e-5, rtol=1e-5)

    # Weighted variant: weights=(fore, back)
    wts = (2.0, 0.5)
    out_w = jax.block_until_ready(bce_loss(pred, label, weights=wts))
    ref_w = _reference_bce(pred, label, weights=wts)
    assert jnp.allclose(out_w, ref_w, atol=1e-5, rtol=1e-5)

    # --- Larger multiple-of-512 shape (lane=512, multi-tile, ragged rows). ---
    pred_l = jax.random.normal(k5, (4, 8, 32, 32), dtype=jnp.float32) * 3.0
    label_l = (jax.random.uniform(k6, (4, 8, 32, 32)) > 0.5).astype(jnp.float32)
    out_l = jax.block_until_ready(bce_loss(pred_l, label_l, weights=wts))
    ref_l = _reference_bce(pred_l, label_l, weights=wts)
    assert jnp.allclose(out_l, ref_l, atol=1e-5, rtol=1e-5)

    # --- Odd total size (exercises the ragged pad + tail-slice fallback). ---
    pred_o = jax.random.normal(k3, (3, 5, 7, 11), dtype=jnp.float32) * 3.0
    label_o = (jax.random.uniform(k4, (3, 5, 7, 11)) > 0.5).astype(jnp.float32)
    out_o = jax.block_until_ready(bce_loss(pred_o, label_o, weights=wts))
    ref_o = _reference_bce(pred_o, label_o, weights=wts)
    assert out_o.shape == pred_o.shape
    assert jnp.allclose(out_o, ref_o, atol=1e-5, rtol=1e-5)

    # --- bf16 I/O (f32 compute inside the kernel, bf16 store, sublane=16). ---
    pred_b = pred.astype(jnp.bfloat16)
    label_b = label.astype(jnp.bfloat16)
    out_b = jax.block_until_ready(bce_loss(pred_b, label_b, weights=None))
    ref_b = _reference_bce(pred_b, label_b, weights=None)
    assert out_b.dtype == jnp.bfloat16
    assert jnp.allclose(out_b.astype(jnp.float32), ref_b, atol=2e-2, rtol=2e-2)

    print("KERNEL_OK")
</pallas_src>

<mosaic_0001>
module attributes {stable_mosaic.version = 11 : i64} {
  func.func @_bce_kernel(%arg0: i32, %arg1: memref<8x128xf32, #tpu.memory_space<vmem>>, %arg2: memref<8x128xf32, #tpu.memory_space<vmem>>, %arg3: memref<8x128xf32, #tpu.memory_space<vmem>>) attributes {dimension_semantics = [#tpu.dimension_semantics<parallel>], iteration_bounds = array<i64: 2>, scalar_prefetch = 0 : i64, scratch_operands = 0 : i64, tpu.core_type = #tpu.core_type<tc>, window_params = [{transform_indices = @transform_0, window_bounds = array<i64: 8, 128>}, {transform_indices = @transform_1, window_bounds = array<i64: 8, 128>}, {transform_indices = @transform_2, window_bounds = array<i64: 8, 128>}]} {
    %c0 = arith.constant 0 : index
    %c0_0 = arith.constant 0 : index
    %0 = vector.load %arg1[%c0, %c0_0] : memref<8x128xf32, #tpu.memory_space<vmem>>, vector<8x128xf32>
    %c0_1 = arith.constant 0 : index
    %c0_2 = arith.constant 0 : index
    %1 = vector.load %arg2[%c0_1, %c0_2] : memref<8x128xf32, #tpu.memory_space<vmem>>, vector<8x128xf32>
    %cst = arith.constant 0.000000e+00 : f32
    %2 = vector.broadcast %cst : f32 to vector<8x128xf32>
    %3 = arith.maximumf %0, %2 : vector<8x128xf32>
    %4 = arith.mulf %0, %1 : vector<8x128xf32>
    %5 = arith.subf %3, %4 : vector<8x128xf32>
    %6 = math.absf %0 : vector<8x128xf32>
    %cst_3 = arith.constant 0.000000e+00 : f32
    %7 = vector.broadcast %cst_3 : f32 to vector<8x128xf32>
    %8 = arith.subf %7, %6 : vector<8x128xf32>
    %9 = math.exp %8 : vector<8x128xf32>
    %10 = math.log1p %9 : vector<8x128xf32>
    %11 = arith.addf %5, %10 : vector<8x128xf32>
    %c0_4 = arith.constant 0 : index
    %c0_5 = arith.constant 0 : index
    %12 = vector.load %arg3[%c0_4, %c0_5] : memref<8x128xf32, #tpu.memory_space<vmem>>, vector<8x128xf32>
    tpu.vector_store %arg3[%c0_4, %c0_5], %11 {strides = array<i32>} : memref<8x128xf32, #tpu.memory_space<vmem>>, vector<8x128xf32>,
    return
  }
  func.func @transform_0(%arg0: i32) -> (i32, i32) {
    %c0_i32 = arith.constant 0 : i32
    %c0_i32_0 = arith.constant 0 : i32
    return %arg0, %c0_i32 : i32, i32
  }
  func.func @transform_1(%arg0: i32) -> (i32, i32) {
    %c0_i32 = arith.constant 0 : i32
    %c0_i32_0 = arith.constant 0 : i32
    return %arg0, %c0_i32 : i32, i32
  }
  func.func @transform_2(%arg0: i32) -> (i32, i32) {
    %c0_i32 = arith.constant 0 : i32
    %c0_i32_0 = arith.constant 0 : i32
    return %arg0, %c0_i32 : i32, i32
  }
}

</mosaic_0001>

<bundles_post_ra>
// kernel: tpu_custom_call.1
= control target key start
LH: loop header
LB: loop body
LE: loop exit
PB: predicated region body
PF: predicated region fallthrough
CT: control target
= control target key end

     0   :  { %7 = vsyncpa [#allocation3], 0  ;;  %s736_s0 = inlined_call_operand.hbm [shape: f32[16,128], index: 0, kind: input, shape index: {}]   ;;  %s737_s1 = inlined_call_operand.hbm [shape: f32[16,128], index: 1, kind: input, shape index: {}]   ;;  %s738_s2 = inlined_call_operand.hbm [shape: f32[16,128], index: 2, kind: output, shape index: {}]  }
   0x1   :  { %9 = vsyncpa [#allocation3 + $0x1], 0 }
   0x2   :  { %10 = vsyncpa [#allocation6], 0 }
   0x3   :  { %12 = vsyncpa [#allocation6 + $0x1], 0 }
   0x4   :  { %13 = vsyncpa [#allocation4], 0 }
   0x5   :  { %15 = vsyncpa [#allocation4 + $0x1], 0  ;;  %s537_s9 = smov 0   ;;  %s539_s10 = smov 0  }
   0x6   :  { %s541_s11 = smov 0   ;;  %s543_s12 = smov 0  }
   0x7 LB: > { %s558_s13 = sadd.s32 4294967295, %s517_s12   ;;  %s323_s14 = sadd.s32 4294967294, %s517_s12   ;;  %s517_s12 = sphi %s543_s12, %s757_s12   ;;  %s513_s11 = sphi %s541_s11, %s756_s11   ;;  %s509_s10 = sphi %s539_s10, %s755_s10   ;;  %s505_s9 = sphi %s537_s9, %s754_s9  }
   0x8   : > { %s562_s15 = sadd.s32 1, %s517_s12   ;;  %s28_s16 = sadd.s32 1, %s513_s11 }
   0x9   : > { %s25_s17 = ssub.s32 %s517_s12, %s562_s15  ;;  %p35_p0 = scmp.ne.s32.totalorder %s513_s11, %s509_s10 }
   0xa   : > { %p26_p1 = scmp.eq.s32.totalorder %s25_s17, 0  ;;  %p36_p2 = scmp.eq.s32.totalorder %s517_s12, 0 }
   0xb   : > { %p41_p3 = scmp.ne.s32.totalorder %s509_s10, %s505_s9  ;;  %p42_p4 = scmp.eq.s32.totalorder %s558_s13, 0 }
   0xc   : > { %s574_s18 = scalar_select %p26_p1, %s513_s11, %s28_s16  }
   0xd   : > { %p576_p5 = por %p36_p2, %p35_p0  ;;  %p580_p6 = por %p42_p4, %p41_p3 }
   0xe   : > { %p91_p7 = scmp.eq.s32.totalorder %s558_s13, 1  ;;  %p97_p8 = scmp.eq.s32.totalorder %s323_s14, 1 }
   0xf   : > { %s742_s20 = scalar_select %p580_p6, 1, 0 }
  0x10   : > { %p355_p10 = scmp.lt.s32.totalorder %s517_s12, 2  ;;  %p587_p11 = por %p91_p7, %p35_p0 }
  0x11   : > { %p591_p12 = por %p97_p8, %p41_p3  ;;  %s596_s23 = sand.u32 1, %s513_s11  }
  0x12   : > { %s743_s21 = scalar_select %p587_p11, 1, 0 }
  0x13   : > { %s744_s22 = scalar_select %p591_p12, 1, 0 }
  0x14   : > { %s327_s24 = sshll.u32 %s517_s12, 7  ;;  %s326_s25 = sshll.u32 %s596_s23, 3 }
  0x15   : > { %s605_s28 = scalar_lea.hbm %s736_s0, %s327_s24  ;;  %s121_s29 = scalar_lea.vmem [#allocation2], %s326_s25 }
  0x16   : > { %s128_s30 = sshll.u32 %s121_s29, 4  ;;  %p611_p13 = pnand %p355_p10, %p576_p5  ;;  %s615_s30 = int_to_ptr.vmem [resolvable:$true] %s128_s30 }
  0x17   : > { %s118_s4 = scalar_lea.sflag [#allocation3], %s596_s23  ;;  %s393_s5 = scalar_lea.hbm %s605_s28, 128 }
  0x18   : > { %p394_p2 = scmp.ne.s32.totalorder %s605_s28, %s393_s5  ;;  %p395_p3 = pneg %p611_p13 }
  0x19   : > { %s398_s8 = scalar_lea.hbm %s736_s0, 256  ;;  %p399_p5 = scmp.lt.s32.totalorder %s605_s28, %s736_s0 }
  0x1a   : > { %p396_p4 = pnand %p395_p3, %p394_p2  ;;  %p400_p8 = scmp.lt.s32.totalorder %s398_s8, %s393_s5 }
  0x1c   : > { %p397_p7 = pneg %p396_p4  ;;  %p401_p10 = por %p400_p8, %p399_p5 }
  0x1e   : > { %p402_p9 = pnand %p401_p10, %p397_p7 }
  0x20   : > { %405 = shalt.err (!%p402_p9)
}
  0x21   : > { %s406_s17 = scalar_lea.vmem %s615_s30, 128  ;;  %s519_s19 = smov [#allocation2]  }
  0x22   : > { %p407_p0 = scmp.ne.s32.totalorder %s615_s30, %s406_s17  ;;  %s411_s26 = sshll.u32 %s519_s19, 4  ;;  %s412_s26 = int_to_ptr.vmem [resolvable:$false] %s411_s26 }
  0x23   : > { %s413_s27 = scalar_lea.vmem %s412_s26, 256  ;;  %p414_p1 = scmp.lt.s32.totalorder %s615_s30, %s412_s26 }
  0x24   : > { %p409_p2 = pnand %p407_p0, %p395_p3  ;;  %p415_p12 = scmp.lt.s32.totalorder %s413_s27, %s406_s17 }
  0x26   : > { %p410_p4 = pneg %p409_p2  ;;  %p416_p11 = por %p415_p12, %p414_p1 }
  0x28   : > { %p417_p5 = pnand %p416_p11, %p410_p4 }
  0x2a   : > { %420 = shalt.err (!%p417_p5)
}
  0x2b   : > { %347 = dma.hbm_to_vmem [thread:$0]  (!%p611_p13), %s605_s28, 128, %s615_s30, %s118_s4  }
  0x2c   : > { %p746_p9 = scmp.lt.s32.totalorder %s517_s12, 3  ;;  %p747_p0 = scmp.ge.s32.totalorder %s517_s12, 1 }
  0x2d   : > { %s657_s7 = scalar_lea.hbm %s737_s1, %s327_s24  ;;  %s139_s8 = scalar_lea.vmem [#allocation5], %s326_s25 }
  0x2e   : > { %p648_p7 = pnand %p747_p0, %p746_p9  ;;  %s146_s14 = sshll.u32 %s139_s8, 4  ;;  %s147_s14 = int_to_ptr.vmem [resolvable:$true] %s146_s14 }
  0x2f   : > { %s136_s28 = scalar_lea.sflag [#allocation6], %s596_s23  ;;  %s421_s30 = scalar_lea.hbm %s657_s7, 128 }
  0x30   : > { %s748_s29 = scalar_select %p648_p7, 1, 0 }
  0x31   : > { %p422_p11 = scmp.ne.s32.totalorder %s657_s7, %s421_s30  ;;  %s426_s17 = scalar_lea.hbm %s737_s1, 256 }
  0x32   : > { %p427_p8 = scmp.lt.s32.totalorder %s657_s7, %s737_s1  ;;  %p428_p10 = scmp.lt.s32.totalorder %s426_s17, %s421_s30 }
  0x33   : > { %p424_p12 = pnand %p422_p11, %p395_p3 }
  0x34   : > { %p429_p2 = por %p428_p10, %p427_p8 }
  0x35   : > { %p425_p1 = pneg %p424_p12 }
  0x37   : > { %p430_p4 = pnand %p429_p2, %p425_p1 }
  0x39   : > { %433 = shalt.err (!%p430_p4)
}
  0x3a   : > { %s434_s25 = scalar_lea.vmem %s147_s14, 128  ;;  %s520_s23 = smov [#allocation5]  }
  0x3b   : > { %p435_p5 = scmp.ne.s32.totalorder %s147_s14, %s434_s25  ;;  %s439_s26 = sshll.u32 %s520_s23, 4  ;;  %s440_s26 = int_to_ptr.vmem [resolvable:$false] %s439_s26 }
  0x3c   : > { %s441_s27 = scalar_lea.vmem %s440_s26, 256  ;;  %p442_p11 = scmp.lt.s32.totalorder %s147_s14, %s440_s26 }
  0x3d   : > { %p437_p9 = pnand %p435_p5, %p395_p3  ;;  %p443_p12 = scmp.lt.s32.totalorder %s441_s27, %s434_s25 }
  0x3f   : > { %p438_p0 = pneg %p437_p9  ;;  %p444_p6 = por %p443_p12, %p442_p11 }
  0x41   : > { %p445_p7 = pnand %p444_p6, %p438_p0 }
  0x43   : > { %448 = shalt.err (!%p445_p7)
}
  0x44   : > { %350 = dma.hbm_to_vmem [thread:$0]  (!%p611_p13), %s657_s7, 128, %s147_s14, %s136_s28  }
  0x45   : > { %p749_p1 = scmp.ne.s32.totalorder %s748_s29, 0 }
  0x46   : > { %s683_s5 = sand.u32 (!%p749_p1), 1, %s509_s10   ;;  %p750_p6 = scmp.ne.s32.totalorder (!%p749_p1), %s742_s20, 0 }
  0x47   : > { %155 = sbr.rel (%p749_p1) target bundleno = 134 (0x86), region = 28  ;;  %s686_s6 = sshll.u32 (!%p749_p1), %s683_s5, 3 }
  0x48   : > { %s158_s8 = scalar_lea.sflag (!%p749_p1), [#allocation3], %s683_s5  ;;  %s161_s30 = scalar_lea.vmem (!%p749_p1), [#allocation2], %s686_s6 }
  0x4c   : > { %492 = dma.done.wait (%p750_p6), %s158_s8, 128  }
  0x4d   : > { %494 = vsyncadd (%p750_p6), %s158_s8, 4294967168  ;;  %s167_s3 = scalar_lea.sflag [#allocation6], %s683_s5  ;;  %s170_s29 = scalar_lea.vmem [#allocation5], %s686_s6 }
  0x4e   : > { %496 = dma.done.wait (%p750_p6), %s167_s3, 128  }
  0x4f   : > { %498 = vsyncadd (%p750_p6), %s167_s3, 4294967168  ;;  %v196_v0 = vld [vmem:[%s161_s30] sm:$0xff]  ;;  %v197_v7 = vld [vmem:[%s170_s29] sm:$0xff]  ;;  %s195_s20 = scalar_lea.vmem [#allocation7], %s686_s6  ;;  %s335_s14 = sshll.u32 %s558_s13, 7 }
  0x50   : > { %v201_v1 = vand.u32 2147483647, %v196_v0  ;;  %v198_v9 = vmax.f32 %v196_v0, 0.0  ;;  %v199_v10 = vmul.f32 %v197_v7, %v196_v0  ;;  %s230_s7 = sshll.u32 %s195_s20, 4  ;;  %s228_s16 = scalar_lea.hbm %s738_s2, %s335_s14  ;;  %s231_s7 = int_to_ptr.vmem [resolvable:$true] %s230_s7 }
  0x51   : > { %s217_s17 = scalar_lea.sflag [#allocation4], %s683_s5  ;;  %s449_s24 = scalar_lea.vmem %s231_s7, 128 }
  0x52   : > { %v202_v2 = vsub.f32 0.0, %v201_v1  ;;  %v200_v14 = vsub.f32 %v198_v9, %v199_v10  ;;  %p450_p13 = scmp.ne.s32.totalorder %s231_s7, %s449_s24  ;;  %p751_p3 = scmp.ne.s32.totalorder %s743_s21, 0 }
  0x53   : > { %s521_s19 = smov [#allocation7]  }
  0x54   : > { %v203_v3 = vmul.f32 1.442695, %v202_v2  ;;  %p451_p7 = pnand %p450_p13, %p751_p3  ;;  %s453_s25 = sshll.u32 %s521_s19, 4  ;;  %s454_s25 = int_to_ptr.vmem [resolvable:$false] %s453_s25 }
  0x55   : > { %s455_s23 = scalar_lea.vmem %s454_s25, 256  ;;  %p456_p10 = scmp.lt.s32.totalorder %s231_s7, %s454_s25 }
  0x56   : > { %389 = vpow2.f32 %v203_v3  ;;  %p452_p8 = pneg %p451_p7  ;;  %p457_p2 = scmp.lt.s32.totalorder %s455_s23, %s449_s24 }
  0x58   : > { %p458_p4 = por %p457_p2, %p456_p10 }
  0x5a   : > { %p459_p5 = pnand %p458_p4, %p452_p8 }
  0x63   : > { %v390_v4 = vpop.eup %389 }
  0x64   : > { %v205_v5 = vadd.f32 1.0, %v390_v4  ;;  %v208_v6 = vmul.f32 -0.5, %v390_v4  ;;  %v211_v11 = vand.u32 2147483647, %v390_v4 }
  0x66   : > { %391 = vlog2.f32 %v205_v5  ;;  %v209_v8 = vadd.f32 1.0, %v208_v6  ;;  %vm212_vm0 = vcmp.lt.f32.partialorder %v211_v11, 0.0004427343 }
  0x68   : > { %v210_v12 = vmul.f32 %v390_v4, %v209_v8 }
  0x73   : > { %v392_v13 = vpop.eup %391 }
  0x74   : > { %v207_v15 = vmul.f32 0.6931472, %v392_v13 }
  0x76   : > { %v213_v16 = vsel %vm212_vm0, %v210_v12, %v207_v15 }
  0x77   : > { %v214_v17 = vadd.f32 %v213_v16, %v200_v14 }
  0x79   : > { %215 = vst [vmem:[%s195_s20] sm:$0xff] %v214_v17 }
  0x7a   : > { %462 = shalt.err (!%p459_p5)
}
  0x7b   : > { %s463_s13 = scalar_lea.hbm %s228_s16, 128  ;;  %s467_s5 = scalar_lea.hbm %s738_s2, 256 }
  0x7c   : > { %p464_p9 = scmp.ne.s32.totalorder %s228_s16, %s463_s13  ;;  %p468_p12 = scmp.lt.s32.totalorder %s228_s16, %s738_s2 }
  0x7d   : > { %p469_p1 = scmp.lt.s32.totalorder %s467_s5, %s463_s13 }
  0x7e   : > { %p465_p0 = pnand %p464_p9, %p751_p3 }
  0x7f   : > { %p470_p6 = por %p469_p1, %p468_p12 }
  0x80   : > { %p466_p11 = pneg %p465_p0 }
  0x82   : > { %p471_p13 = pnand %p470_p6, %p466_p11 }
  0x84   : > { %474 = shalt.err (!%p471_p13)
}
  0x85   : > { %342 = dma.vmem_to_hbm [thread:$0]  (%p751_p3), %s231_s7, 128, %s228_s16, %s217_s17  }
  0x86 PF: > { %s242_s30 = sand.u32 1, %s505_s9   ;;  %p752_p7 = scmp.ne.s32.totalorder %s744_s22, 0 }
  0x87   : > { %p753_p8 = scmp.ge.s32.totalorder %s517_s12, 2  ;;  %s243_s3 = scalar_lea.sflag [#allocation4], %s242_s30 }
  0x89   : > { %p352_p10 = pnand %p753_p8, %p752_p7 }
  0x8b   : > { %p353_p2 = pneg %p352_p10 }
  0x8d   : > { %500 = dma.done.wait (%p353_p2), %s243_s3, 128  }
  0x8e   : > { %502 = vsyncadd (%p353_p2), %s243_s3, 4294967168  ;;  %p18_p4 = scmp.ge.s32.totalorder %s562_s15, 4   ;;  %s754_s9 = smov %s509_s10 }
  0x8f   : > { %s755_s10 = smov %s513_s11  ;;  %s756_s11 = smov %s574_s18 }
  0x90   : > { %s757_s12 = smov %s562_s15  ;;  %20 = sbr.rel (!%p18_p4) target bundleno = 7 (0x7), region = 86 }
  0x95   :  { %248 = vsyncpa [#allocation3], 1 }
  0x96   :  { %250 = vsyncpa [#allocation3 + $0x1], 1 }
  0x97   :  { %251 = vsyncpa [#allocation6], 1 }
  0x98   :  { %253 = vsyncpa [#allocation6 + $0x1], 1 }
  0x99   :  { %254 = vsyncpa [#allocation4], 1 }
  0x9a   :  { %256 = vsyncpa [#allocation4 + $0x1], 1 }

</bundles_post_ra>
